<compile_context>
chip_gen: v7x
topology: tpu7x:2x2x1
jax: 0.10.0
libtpu: 0.0.40
codegen_flags: <defaults>
</compile_context>

<pallas_src>
import jax
import jax.numpy as jnp
from jax import lax
from jax.experimental import pallas as pl
from jax.experimental.pallas import tpu as pltpu

LRELU_SLOPE = 0.2
BN_EPS = 1e-5


# --------------------------------------------------------------------------- kernels
def _conv_stats_kernel(w_ref, p_ref, y_ref, sum_ref, sq_ref):
    """Per (phase, row-tile) grid step.
       w_ref : (1, C_out, KKC)  per-phase packed weights
       p_ref : (1, KKC, T)      per-phase im2col patch tile (rows on lanes)
       y_ref : (1, C_out, T)    conv output tile (lane-dense store, NO bias — it
                                cancels under training-mode BN)
       sum_ref/sq_ref : (1, C_out, 1)  per-tile partial sum / sum of squares.
       Lane-padded columns of p_ref are zero -> contribute 0 to both sums, so no
       masking is needed.
    """
    w = w_ref[0]                                                # (C_out, KKC)
    x = p_ref[0]                                                # (KKC, T)
    acc = jnp.dot(w, x, preferred_element_type=jnp.float32)     # (C_out, T), one MXU dot
    y_ref[0] = acc.astype(y_ref.dtype)
    sum_ref[0] = jnp.sum(acc, axis=-1, keepdims=True)
    sq_ref[0] = jnp.sum(acc * acc, axis=-1, keepdims=True)


def _bn_lrelu_kernel(scale_ref, shift_ref, y_ref, o_ref):
    """Normalize + LeakyReLU(0.2).  scale/shift: (C_out, 1); y/o tiles: (1, C_out, T)."""
    y = y_ref[0] * scale_ref[...] + shift_ref[...]
    o_ref[0] = jnp.maximum(y, LRELU_SLOPE * y).astype(o_ref.dtype)


# ------------------------------------------------------------------ polyphase packing
def _phase_taps_1d(K, s, p, phase, Kp):
    """Kernel taps k contributing to output positions o with o % s == phase, and the
    input offsets d such that input index = m + d for output index o = phase + s*m.
    Zero-weight filler taps (k = -1) pad the list to Kp."""
    ks = [k for k in range(K) if (k % s) == ((phase + p) % s)]
    ds = [(phase + p - k) // s for k in ks]
    fill_d = ds[0] if ds else 0
    while len(ks) < Kp:
        ks.append(-1)
        ds.append(fill_d)
    return ks, ds


def _build_polyphase(x_nhwc, w_tconv, K, s, p, Mh, Mw):
    """Build per-phase transposed patches (KKC, R) and packed weights (C_out, KKC)."""
    N, H, W, C_in = x_nhwc.shape
    C_out = w_tconv.shape[1]
    Kp = -(-K // s)
    KKC = Kp * Kp * C_in

    h_taps = [_phase_taps_1d(K, s, p, ph, Kp) for ph in range(s)]
    w_taps = [_phase_taps_1d(K, s, p, pw, Kp) for pw in range(s)]

    dh_all = [d for _, dd in h_taps for d in dd]
    dw_all = [d for _, dd in w_taps for d in dd]
    pad_h_lo = max(0, -min(dh_all))
    pad_h_hi = max(0, (Mh - 1) + max(dh_all) - (H - 1))
    pad_w_lo = max(0, -min(dw_all))
    pad_w_hi = max(0, (Mw - 1) + max(dw_all) - (W - 1))
    x_p = jnp.pad(x_nhwc, ((0, 0), (pad_h_lo, pad_h_hi), (pad_w_lo, pad_w_hi), (0, 0)))

    R = N * Mh * Mw
    patches, weights = [], []
    for ph in range(s):
        kh_list, dh_list = h_taps[ph]
        for pw in range(s):
            kw_list, dw_list = w_taps[pw]
            cols, wrows = [], []
            for th in range(Kp):
                h0 = pad_h_lo + dh_list[th]
                for tw in range(Kp):
                    w0 = pad_w_lo + dw_list[tw]
                    cols.append(x_p[:, h0:h0 + Mh, w0:w0 + Mw, :])       # (N,Mh,Mw,Cin)
                    if kh_list[th] >= 0 and kw_list[tw] >= 0:
                        wrows.append(w_tconv[:, :, kh_list[th], kw_list[tw]])  # (Cin,Cout)
                    else:
                        wrows.append(jnp.zeros((C_in, C_out), w_tconv.dtype))
            pmat = jnp.concatenate(cols, axis=-1).reshape(R, KKC)
            patches.append(pmat.T)                                       # (KKC, R)
            weights.append(jnp.concatenate(wrows, axis=0).T)             # (C_out, KKC)
    return jnp.stack(patches), jnp.stack(weights), KKC, R


# ----------------------------------------------------------------------------- forward
def deconvolution_forward(x_nchw, w_tconv, bias, *, stride, padding,
                          gamma=None, beta=None, eps=BN_EPS):
    """torch Deconvolution(...) forward in training mode (BN uses batch statistics).
    x_nchw : (N, C_in, H, W); w_tconv: (C_in, C_out, K, K) torch ConvTranspose2d layout;
    bias: (C_out,).  Returns (N, C_out, H_out, W_out).

    Note: with training-mode BatchNorm directly after the transposed conv, the conv
    bias cancels exactly ((conv+b) - mean(conv+b) == conv - mean(conv)), so it never
    enters the kernels."""
    del bias  # cancels under training-mode BatchNorm (see docstring)
    N, C_in, H, W = x_nchw.shape
    c_in_w, C_out, K, _ = w_tconv.shape
    assert c_in_w == C_in
    s, p = int(stride), int(padding)
    H_out = (H - 1) * s - 2 * p + K
    W_out = (W - 1) * s - 2 * p + K
    assert H_out > 0 and W_out > 0
    if H_out % s or W_out % s:
        # TODO(synk): uneven output phases (H_out % stride != 0) need per-phase row counts.
        raise NotImplementedError("output size must be divisible by stride")
    Mh, Mw = H_out // s, W_out // s

    if gamma is None:
        gamma = jnp.ones((C_out,), jnp.float32)
    if beta is None:
        beta = jnp.zeros((C_out,), jnp.float32)

    x = jnp.transpose(x_nchw, (0, 2, 3, 1)).astype(jnp.float32)          # NHWC
    patches, weights, KKC, R = _build_polyphase(
        x, w_tconv.astype(jnp.float32), K, s, p, Mh, Mw)

    # Row tiling: the flattened (N*Mh*Mw) spatial axis lives on the lane dim.
    # Cap the tile so (patch + conv-out) double-buffers stay well inside VMEM.
    bytes_per_col = 4 * (KKC + 2 * C_out) * 2          # f32, in+out, double-buffered
    max_T = max(128, min(4096, (6 << 20) // max(1, bytes_per_col) // 128 * 128))
    T = min(max_T, ((R + 127) // 128) * 128)
    R_pad = ((R + T - 1) // T) * T
    num_t = R_pad // T
    if R_pad != R:
        patches = jnp.pad(patches, ((0, 0), (0, 0), (0, R_pad - R)))

    n_phase = s * s

    y_conv, psum, psq = pl.pallas_call(
        _conv_stats_kernel,
        grid=(n_phase, num_t),
        out_shape=(
            jax.ShapeDtypeStruct((n_phase, C_out, R_pad), jnp.float32),
            jax.ShapeDtypeStruct((n_phase * num_t, C_out, 1), jnp.float32),
            jax.ShapeDtypeStruct((n_phase * num_t, C_out, 1), jnp.float32),
        ),
        in_specs=[
            pl.BlockSpec((1, C_out, KKC), lambda ph, t: (ph, 0, 0)),
            pl.BlockSpec((1, KKC, T), lambda ph, t: (ph, 0, t)),
        ],
        out_specs=(
            pl.BlockSpec((1, C_out, T), lambda ph, t: (ph, 0, t)),
            pl.BlockSpec((1, C_out, 1), lambda ph, t: (ph * num_t + t, 0, 0)),
            pl.BlockSpec((1, C_out, 1), lambda ph, t: (ph * num_t + t, 0, 0)),
        ),
        compiler_params=pltpu.CompilerParams(
            dimension_semantics=("parallel", "parallel")),
    )(weights, patches)

    # Tiny cross-tile reduction + BN scale/shift (plain JAX glue).
    count = float(N * H_out * W_out)
    s1 = jnp.sum(psum[:, :, 0], axis=0)
    s2 = jnp.sum(psq[:, :, 0], axis=0)
    mean = s1 / count
    var = jnp.maximum(s2 / count - mean * mean, 0.0)
    rstd = lax.rsqrt(var + eps)
    scale = (gamma * rstd).reshape(C_out, 1).astype(jnp.float32)
    shift = (beta - mean * gamma * rstd).reshape(C_out, 1).astype(jnp.float32)

    out_phases = pl.pallas_call(
        _bn_lrelu_kernel,
        grid=(n_phase, num_t),
        out_shape=jax.ShapeDtypeStruct((n_phase, C_out, R_pad), x_nchw.dtype),
        in_specs=[
            pl.BlockSpec((C_out, 1), lambda ph, t: (0, 0)),
            pl.BlockSpec((C_out, 1), lambda ph, t: (0, 0)),
            pl.BlockSpec((1, C_out, T), lambda ph, t: (ph, 0, t)),
        ],
        out_specs=pl.BlockSpec((1, C_out, T), lambda ph, t: (ph, 0, t)),
        compiler_params=pltpu.CompilerParams(
            dimension_semantics=("parallel", "parallel")),
    )(scale, shift, y_conv)

    # Undo phase layout: (s*s, C_out, R) -> (N, C_out, H_out, W_out).
    out = out_phases[:, :, :R].reshape(s, s, C_out, N, Mh, Mw)
    out = jnp.transpose(out, (3, 2, 4, 0, 5, 1)).reshape(N, C_out, H_out, W_out)
    return out


# ---------------------------------------------------------------------------- reference
def _reference(x_nchw, w_tconv, bias, *, stride, padding):
    """Pure-JAX reference (lhs-dilated conv == transposed conv) for sanity check."""
    K = w_tconv.shape[-1]
    w_flip = jnp.transpose(w_tconv[:, :, ::-1, ::-1], (1, 0, 2, 3))  # OIHW
    y = lax.conv_general_dilated(
        x_nchw, w_flip, window_strides=(1, 1),
        padding=[(K - 1 - padding, K - 1 - padding)] * 2,
        lhs_dilation=(stride, stride),
        dimension_numbers=('NCHW', 'OIHW', 'NCHW'))
    y = y + bias[None, :, None, None]
    mean = jnp.mean(y, axis=(0, 2, 3), keepdims=True)
    var = jnp.mean((y - mean) ** 2, axis=(0, 2, 3), keepdims=True)
    y = (y - mean) / jnp.sqrt(var + BN_EPS)
    return jnp.where(y > 0, y, LRELU_SLOPE * y)


if __name__ == "__main__":
    # Module config: Deconvolution(input_dim=4, output_dim=8, kernel_size=4, stride=2,
    #                              padding=1, activation='lrelu', use_bias=True)
    N, C_in, H, W = 2, 4, 16, 16
    C_out, K, stride, padding = 8, 4, 2, 1

    key = jax.random.PRNGKey(0)
    kx, kw = jax.random.split(key)
    x = jax.random.normal(kx, (N, C_in, H, W), dtype=jnp.float32)
    # weights_init('gaussian'): weight ~ N(0, 0.02), bias = 0
    w_tconv = 0.02 * jax.random.normal(kw, (C_in, C_out, K, K), dtype=jnp.float32)
    bias = jnp.zeros((C_out,), dtype=jnp.float32)

    out = deconvolution_forward(x, w_tconv, bias, stride=stride, padding=padding)
    out = jax.block_until_ready(out)

    assert out.shape == (N, C_out, (H - 1) * stride - 2 * padding + K,
                         (W - 1) * stride - 2 * padding + K)

    ref = _reference(x, w_tconv, bias, stride=stride, padding=padding)
    assert jnp.allclose(out, ref, atol=2e-4, rtol=2e-4), "mismatch vs JAX reference"

    print("KERNEL_OK")
</pallas_src>

<mosaic_0001>
module attributes {stable_mosaic.version = 11 : i64} {
  func.func @_conv_stats_kernel(%arg0: i32, %arg1: i32, %arg2: memref<1x8x16xf32, #tpu.memory_space<vmem>>, %arg3: memref<1x16x512xf32, #tpu.memory_space<vmem>>, %arg4: memref<1x8x512xf32, #tpu.memory_space<vmem>>, %arg5: memref<1x8x1xf32, #tpu.memory_space<vmem>>, %arg6: memref<1x8x1xf32, #tpu.memory_space<vmem>>) attributes {dimension_semantics = [#tpu.dimension_semantics<parallel>, #tpu.dimension_semantics<parallel>], iteration_bounds = array<i64: 4, 1>, scalar_prefetch = 0 : i64, scratch_operands = 0 : i64, tpu.core_type = #tpu.core_type<tc>, window_params = [{transform_indices = @transform_0, window_bounds = array<i64: 1, 8, 16>}, {transform_indices = @transform_1, window_bounds = array<i64: 1, 16, 512>}, {transform_indices = @transform_2, window_bounds = array<i64: 1, 8, 512>}, {transform_indices = @transform_3, window_bounds = array<i64: 1, 8, 1>}, {transform_indices = @transform_4, window_bounds = array<i64: 1, 8, 1>}]} {
    %c0 = arith.constant 0 : index
    %c0_0 = arith.constant 0 : index
    %c0_1 = arith.constant 0 : index
    %0 = vector.load %arg2[%c0, %c0_0, %c0_1] : memref<1x8x16xf32, #tpu.memory_space<vmem>>, vector<1x8x16xf32>
    %1 = vector.shape_cast %0 : vector<1x8x16xf32> to vector<8x16xf32>
    %c0_2 = arith.constant 0 : index
    %c0_3 = arith.constant 0 : index
    %c0_4 = arith.constant 0 : index
    %2 = vector.load %arg3[%c0_2, %c0_3, %c0_4] : memref<1x16x512xf32, #tpu.memory_space<vmem>>, vector<1x16x512xf32>
    %3 = vector.shape_cast %2 : vector<1x16x512xf32> to vector<16x512xf32>
    %cst = arith.constant dense<0.000000e+00> : vector<8x512xf32>
    %4 = tpu.matmul %1, %3, %cst {dimension_numbers = #tpu.dot_dimension_numbers<[1], [0], [0], [1], [0, 0, 1, 1], [], []>} : vector<8x16xf32>, vector<16x512xf32>, vector<8x512xf32> -> vector<8x512xf32>
    %c0_5 = arith.constant 0 : index
    %c0_6 = arith.constant 0 : index
    %c0_7 = arith.constant 0 : index
    %5 = vector.load %arg4[%c0_5, %c0_6, %c0_7] : memref<1x8x512xf32, #tpu.memory_space<vmem>>, vector<1x8x512xf32>
    %6 = vector.shape_cast %5 : vector<1x8x512xf32> to vector<8x512xf32>
    %7 = vector.shape_cast %4 : vector<8x512xf32> to vector<1x8x512xf32>
    tpu.vector_store %arg4[%c0_5, %c0_6, %c0_7], %7 {strides = array<i32>} : memref<1x8x512xf32, #tpu.memory_space<vmem>>, vector<1x8x512xf32>,
    %cst_8 = arith.constant dense<0.000000e+00> : vector<8xf32>
    %8 = vector.multi_reduction <add>, %4, %cst_8 [1] : vector<8x512xf32> to vector<8xf32>
    %9 = vector.shape_cast %8 : vector<8xf32> to vector<8x1xf32>
    %c0_9 = arith.constant 0 : index
    %c0_10 = arith.constant 0 : index
    %c0_11 = arith.constant 0 : index
    %10 = vector.load %arg5[%c0_9, %c0_10, %c0_11] : memref<1x8x1xf32, #tpu.memory_space<vmem>>, vector<1x8x1xf32>
    %11 = vector.shape_cast %10 : vector<1x8x1xf32> to vector<8x1xf32>
    %12 = vector.shape_cast %9 : vector<8x1xf32> to vector<1x8x1xf32>
    tpu.vector_store %arg5[%c0_9, %c0_10, %c0_11], %12 {strides = array<i32>} : memref<1x8x1xf32, #tpu.memory_space<vmem>>, vector<1x8x1xf32>,
    %13 = arith.mulf %4, %4 : vector<8x512xf32>
    %cst_12 = arith.constant dense<0.000000e+00> : vector<8xf32>
    %14 = vector.multi_reduction <add>, %13, %cst_12 [1] : vector<8x512xf32> to vector<8xf32>
    %15 = vector.shape_cast %14 : vector<8xf32> to vector<8x1xf32>
    %c0_13 = arith.constant 0 : index
    %c0_14 = arith.constant 0 : index
    %c0_15 = arith.constant 0 : index
    %16 = vector.load %arg6[%c0_13, %c0_14, %c0_15] : memref<1x8x1xf32, #tpu.memory_space<vmem>>, vector<1x8x1xf32>
    %17 = vector.shape_cast %16 : vector<1x8x1xf32> to vector<8x1xf32>
    %18 = vector.shape_cast %15 : vector<8x1xf32> to vector<1x8x1xf32>
    tpu.vector_store %arg6[%c0_13, %c0_14, %c0_15], %18 {strides = array<i32>} : memref<1x8x1xf32, #tpu.memory_space<vmem>>, vector<1x8x1xf32>,
    return
  }
  func.func @transform_0(%arg0: i32, %arg1: i32) -> (i32, i32, i32) {
    %c0_i32 = arith.constant 0 : i32
    %c0_i32_0 = arith.constant 0 : i32
    %c0_i32_1 = arith.constant 0 : i32
    return %arg0, %c0_i32, %c0_i32_0 : i32, i32, i32
  }
  func.func @transform_1(%arg0: i32, %arg1: i32) -> (i32, i32, i32) {
    %c0_i32 = arith.constant 0 : i32
    %c0_i32_0 = arith.constant 0 : i32
    return %arg0, %c0_i32, %arg1 : i32, i32, i32
  }
  func.func @transform_2(%arg0: i32, %arg1: i32) -> (i32, i32, i32) {
    %c0_i32 = arith.constant 0 : i32
    %c0_i32_0 = arith.constant 0 : i32
    return %arg0, %c0_i32, %arg1 : i32, i32, i32
  }
  func.func @transform_3(%arg0: i32, %arg1: i32) -> (i32, i32, i32) {
    %c1_i32 = arith.constant 1 : i32
    %0 = arith.muli %arg0, %c1_i32 : i32
    %1 = arith.addi %0, %arg1 : i32
    %c0_i32 = arith.constant 0 : i32
    %c0_i32_0 = arith.constant 0 : i32
    %c0_i32_1 = arith.constant 0 : i32
    return %1, %c0_i32, %c0_i32_0 : i32, i32, i32
  }
  func.func @transform_4(%arg0: i32, %arg1: i32) -> (i32, i32, i32) {
    %c1_i32 = arith.constant 1 : i32
    %0 = arith.muli %arg0, %c1_i32 : i32
    %1 = arith.addi %0, %arg1 : i32
    %c0_i32 = arith.constant 0 : i32
    %c0_i32_0 = arith.constant 0 : i32
    %c0_i32_1 = arith.constant 0 : i32
    return %1, %c0_i32, %c0_i32_0 : i32, i32, i32
  }
}

</mosaic_0001>

<bundles_post_ra>
// kernel: tpu_custom_call.1
= control target key start
LH: loop header
LB: loop body
LE: loop exit
PB: predicated region body
PF: predicated region fallthrough
CT: control target
= control target key end

     0   :  { %10 = vsyncpa [#allocation3], 0  ;;  %s1177_s0 = inlined_call_operand.hbm [shape: f32[4,8,16], index: 0, kind: input, shape index: {}]   ;;  %s1178_s1 = inlined_call_operand.hbm [shape: f32[4,16,512], index: 1, kind: input, shape index: {}]   ;;  %s1179_s2 = inlined_call_operand.hbm [shape: f32[4,8,512], index: 2, kind: output, shape index: {0}]   ;;  %s1180_s3 = inlined_call_operand.vmem [shape: f32[4,8,1], index: 3, kind: output, shape index: {1}]   ;;  %s1181_s4 = inlined_call_operand.vmem [shape: f32[4,8,1], index: 4, kind: output, shape index: {2}]  }
   0x1   :  { %12 = vsyncpa [#allocation3 + $0x1], 0 }
   0x2   :  { %13 = vsyncpa [#allocation6], 0 }
   0x3   :  { %15 = vsyncpa [#allocation6 + $0x1], 0 }
   0x4   :  { %16 = vsyncpa [#allocation4], 0 }
   0x5   :  { %18 = vsyncpa [#allocation4 + $0x1], 0  ;;  %s953_s15 = smov 0   ;;  %s955_s16 = smov 0  }
   0x6   :  { %s957_s17 = smov 0   ;;  %s959_s18 = smov 0  }
   0x7   :  { %s961_s19 = smov 0   ;;  %s963_s20 = smov 0  }
   0x8 LB: > { %s672_s21 = sadd.s32 4294967295, %s920_s20   ;;  %s673_s22 = sadd.s32 4294967294, %s920_s20   ;;  %s920_s20 = sphi %s963_s20, %s24_s20   ;;  %s916_s19 = sphi %s961_s19, %s1199_s19   ;;  %s912_s18 = sphi %s959_s18, %s1198_s18   ;;  %s908_s17 = sphi %s957_s17, %s1197_s17   ;;  %s904_s16 = sphi %s955_s16, %s1196_s16   ;;  %s900_s15 = sphi %s953_s15, %s1195_s15  }
   0x9   : > { %s36_s23 = sadd.s32 1, %s916_s19  ;;  %s43_s24 = sadd.s32 1, %s908_s17 }
   0xa   : > { %p38_p0 = scmp.ge.s32.totalorder %s36_s23, 4  ;;  %p50_p1 = scmp.ne.s32.totalorder %s908_s17, %s904_s16 }
   0xb   : > { %p51_p2 = scmp.eq.s32.totalorder %s920_s20, 0  ;;  %p56_p3 = scmp.ne.s32.totalorder %s904_s16, %s900_s15 }
   0xc   : > { %s1201_s23 = smov (%p38_p0, %s36_s23), 0  ;;  %p57_p5 = scmp.eq.s32.totalorder %s672_s21, 0 }
   0xd   : > { %p994_p4 = por %p51_p2, %p50_p1  ;;  %s40_s26 = ssub.s32 %s916_s19, %s1201_s23 }
   0xe   : > { %p110_p6 = scmp.eq.s32.totalorder %s672_s21, 3  ;;  %p41_p7 = scmp.eq.s32.totalorder %s40_s26, 0 }
   0xf   : > { %p1000_p8 = por %p57_p5, %p56_p3  ;;  %p116_p10 = scmp.eq.s32.totalorder %s673_s22, 3 }
  0x10   : > { %p1004_p9 = por %p110_p6, %p50_p1  ;;  %p721_p12 = scmp.lt.s32.totalorder %s920_s20, 4 }
  0x11   : > { %s1185_s27 = scalar_select %p1000_p8, 1, 0 }
  0x12   : > { %s1186_s28 = scalar_select %p1004_p9, 1, 0 }
  0x13   : > { %s1009_s29 = scalar_select %p41_p7, %s908_s17, %s43_s24  }
  0x14   : > { %p1011_p11 = por %p116_p10, %p56_p3  ;;  %s1017_s5 = sand.u32 1, %s908_s17  }
  0x15   : > { %s676_s6 = sshll.u32 %s1017_s5, 3  ;;  %s677_s7 = sshll.u32 %s916_s19, 7 }
  0x16   : > { %s1187_s30 = scalar_select %p1011_p11, 1, 0 }
  0x17   : > { %s1024_s10 = scalar_lea.hbm %s1177_s0, %s677_s7  ;;  %s196_s11 = scalar_lea.vmem [#allocation2], %s676_s6 }
  0x18   : > { %s203_s12 = sshll.u32 %s196_s11, 4  ;;  %p1030_p13 = pnand %p721_p12, %p994_p4  ;;  %s1026_s12 = int_to_ptr.vmem [resolvable:$true] %s203_s12 }
  0x19   : > { %s193_s14 = scalar_lea.sflag [#allocation3], %s1017_s5  ;;  %s774_s21 = scalar_lea.hbm %s1024_s10, 128 }
  0x1a   : > { %p775_p2 = scmp.ne.s32.totalorder %s1024_s10, %s774_s21  ;;  %p776_p3 = pneg %p1030_p13 }
  0x1b   : > { %s779_s25 = scalar_lea.hbm %s1177_s0, 512  ;;  %p780_p4 = scmp.lt.u32.totalorder %s1024_s10, %s1177_s0 }
  0x1c   : > { %p777_p5 = pnand %p776_p3, %p775_p2  ;;  %p781_p7 = scmp.lt.u32.totalorder %s779_s25, %s774_s21 }
  0x1d   : > { %p783_p12 = scmp.lt.u32.totalorder %s774_s21, %s1024_s10 }
  0x1e   : > { %p778_p6 = pneg %p777_p5  ;;  %p782_p10 = por %p781_p7, %p780_p4 }
  0x20   : > { %p784_p0 = por %p783_p12, %p782_p10 }
  0x22   : > { %p785_p1 = pnand %p784_p0, %p778_p6 }
  0x24   : > { %788 = shalt.err (!%p785_p1)
}
  0x25   : > { %s789_s7 = scalar_lea.vmem %s1026_s12, 128  ;;  %s922_s8 = smov [#allocation2]  }
  0x26   : > { %p790_p2 = scmp.ne.s32.totalorder %s1026_s12, %s789_s7  ;;  %s794_s9 = sshll.u32 %s922_s8, 4  ;;  %s795_s9 = int_to_ptr.vmem [resolvable:$false] %s794_s9 }
  0x27   : > { %s796_s11 = scalar_lea.vmem %s795_s9, 256  ;;  %p797_p9 = scmp.lt.s32.totalorder %s1026_s12, %s795_s9 }
  0x28   : > { %p792_p5 = pnand %p790_p2, %p776_p3  ;;  %p798_p4 = scmp.lt.s32.totalorder %s796_s11, %s789_s7 }
  0x2a   : > { %p793_p11 = pneg %p792_p5  ;;  %p799_p7 = por %p798_p4, %p797_p9 }
  0x2c   : > { %p800_p10 = pnand %p799_p7, %p793_p11 }
  0x2e   : > { %803 = shalt.err (!%p800_p10)
}
  0x2f   : > { %713 = dma.hbm_to_vmem [thread:$0]  (!%p1030_p13), %s1024_s10, 128, %s1026_s12, %s193_s14  }
  0x30   : > { %p1189_p0 = scmp.lt.s32.totalorder %s920_s20, 5  ;;  %p1190_p1 = scmp.ge.s32.totalorder %s920_s20, 1 }
  0x31   : > { %s678_s22 = sshll.u32 %s1017_s5, 6  ;;  %s694_s24 = sshll.u32 %s916_s19, 10 }
  0x32   : > { %p1066_p6 = pnand %p1190_p1, %p1189_p0  ;;  %s1075_s6 = scalar_lea.hbm %s1178_s1, %s694_s24 }
  0x33   : > { %s214_s7 = scalar_lea.vmem [#allocation5], %s678_s22  ;;  %s211_s10 = scalar_lea.sflag [#allocation6], %s1017_s5 }
  0x34   : > { %s223_s8 = sshll.u32 %s214_s7, 4  ;;  %s804_s12 = scalar_lea.hbm %s1075_s6, 1024  ;;  %s1077_s8 = int_to_ptr.vmem [resolvable:$true] %s223_s8 }
  0x35   : > { %p805_p9 = scmp.ne.s32.totalorder %s1075_s6, %s804_s12  ;;  %s809_s11 = scalar_lea.hbm %s1178_s1, 4096 }
  0x36   : > { %p810_p2 = scmp.lt.u32.totalorder %s1075_s6, %s1178_s1  ;;  %p811_p5 = scmp.lt.u32.totalorder %s809_s11, %s804_s12 }
  0x37   : > { %p807_p11 = pnand %p805_p9, %p776_p3  ;;  %p813_p7 = scmp.lt.u32.totalorder %s804_s12, %s1075_s6 }
  0x38   : > { %p812_p4 = por %p811_p5, %p810_p2 }
  0x39   : > { %p808_p12 = pneg %p807_p11 }
  0x3a   : > { %p814_p10 = por %p813_p7, %p812_p4 }
  0x3c   : > { %p815_p0 = pnand %p814_p10, %p808_p12 }
  0x3e   : > { %818 = shalt.err (!%p815_p0)
}
  0x3f   : > { %s819_s22 = scalar_lea.vmem %s1077_s8, 1024  ;;  %s923_s26 = smov [#allocation5]  }
  0x40   : > { %p820_p1 = scmp.ne.s32.totalorder %s1077_s8, %s819_s22  ;;  %s824_s7 = sshll.u32 %s923_s26, 4  ;;  %s825_s7 = int_to_ptr.vmem [resolvable:$false] %s824_s7 }
  0x41   : > { %s826_s14 = scalar_lea.vmem %s825_s7, 2048  ;;  %p827_p8 = scmp.lt.s32.totalorder %s1077_s8, %s825_s7 }
  0x42   : > { %p822_p9 = pnand %p820_p1, %p776_p3  ;;  %p828_p2 = scmp.lt.s32.totalorder %s826_s14, %s819_s22 }
  0x44   : > { %p823_p11 = pneg %p822_p9  ;;  %p829_p5 = por %p828_p2, %p827_p8 }
  0x46   : > { %p830_p4 = pnand %p829_p5, %p823_p11 }
  0x48   : > { %833 = shalt.err (!%p830_p4)
}
  0x49   : > { %s924_s12 = smov 512   ;;  %s925_s9 = smov 32  }
  0x4a   : > { %716 = dma.hbm_to_vmem [thread:$0]  (!%p1030_p13), %s1075_s6, 1024, %s1077_s8, %s211_s10, %s924_s12, %s924_s12, %s925_s9  }
  0x4b   : > { %235 = sbr.rel (%p1066_p6) target bundleno = 460 (0x1cc), region = 28  ;;  %s1108_s11 = sand.u32 (!%p1066_p6), 1, %s904_s16  }
  0x4c   : > { %s682_s24 = sshll.u32 (!%p1066_p6), %s1108_s11, 3  ;;  %s238_s25 = scalar_lea.sflag (!%p1066_p6), [#allocation3], %s1108_s11 }
  0x4d   : > { %s241_s22 = scalar_lea.vmem (!%p1066_p6), [#allocation2], %s682_s24  ;;  %p1192_p8 = scmp.ne.s32.totalorder (!%p1066_p6), %s1185_s27, 0 }
  0x52   : > { %887 = dma.done.wait (%p1192_p8), %s238_s25, 128  }
  0x53   : > { %889 = vsyncadd (%p1192_p8), %s238_s25, 4294967168  ;;  %s683_s5 = sshll.u32 %s1108_s11, 6  ;;  %s247_s13 = scalar_lea.sflag [#allocation6], %s1108_s11 }
  0x54   : > { %s250_s21 = scalar_lea.vmem [#allocation5], %s683_s5 }
  0x55   : > { %891 = dma.done.wait (%p1192_p8), %s247_s13, 1024  }
  0x56   : > { %893 = vsyncadd (%p1192_p8), %s247_s13, 4294966272  ;;  %v926_v0 = vmov 0.0   ;;  %v306_v1 = vld [vmem:[%s250_s21 + $0x8] sm:$0xff]  ;;  %v305_v3 = vld [vmem:[%s250_s21] sm:$0xff]  ;;  %vm313_vm0 = vcmask 130048   ;;  %s684_s27 = sshll.u32 %s1108_s11, 5 }
  0x57   : > { %381 = vmatprep.mubr.f32.mxu0 %v926_v0  ;;  %452 = vmatprep.mubr.f32.mxu1 %v926_v0  ;;  %v310_v2 = vld [vmem:[%s250_s21 + $0x28] sm:$0xff]  ;;  %v309_v5 = vld [vmem:[%s250_s21 + $0x20] sm:$0xff]  ;;  %v308_v6 = vld [vmem:[%s250_s21 + $0x18] sm:$0xff]  ;;  %s275_s6 = scalar_lea.vmem [#allocation7], %s684_s27  ;;  %s695_s8 = sshll.u32 %s912_s18, 9 }
  0x58   : > { %v696_v4 = vpack.c.bf16 %v310_v2, %v306_v1  ;;  %v312_v7 = vld [vmem:[%s250_s21 + $0x38] sm:$0xff]  ;;  %v698_v8 = vpack.c.bf16 %v309_v5, %v305_v3  ;;  %v307_v10 = vld [vmem:[%s250_s21 + $0x10] sm:$0xff]  ;;  %s507_s10 = sshll.u32 %s275_s6, 4  ;;  %s1127_s14 = scalar_lea.hbm %s1179_s2, %s695_s8  ;;  %s508_s10 = int_to_ptr.vmem [resolvable:$true] %s507_s10 }
  0x59   : > { %v700_v9 = vpack.c.bf16 %v312_v7, %v308_v6  ;;  %v311_v11 = vld [vmem:[%s250_s21 + $0x30] sm:$0xff]  ;;  %s481_s12 = scalar_lea.sflag [#allocation4], %s1108_s11  ;;  %s834_s9 = scalar_lea.vmem %s508_s10, 512 }
  0x5a   : > { %697 = vmatprep.subr.bf16.mxu0 %v696_v4  ;;  %v702_v12 = vpack.c.bf16 %v311_v11, %v307_v10  ;;  %v304_v13 = vld [vmem:[%s241_s22] sm:$0xff]  ;;  %p835_p13 = scmp.ne.s32.totalorder %s508_s10, %s834_s9  ;;  %p1193_p3 = scmp.ne.s32.totalorder %s1186_s28, 0 }
  0x5b   : > { %699 = vmatpush1.bf16.msra.mxu0 %v698_v8  ;;  %701 = vmatprep.subr.bf16.mxu1 %v700_v9  ;;  %s927_s24 = smov [#allocation7]  }
  0x5c   : > { %703 = vmatpush1.bf16.msra.mxu1 %v702_v12  ;;  %p836_p6 = pnand %p835_p13, %p1193_p3  ;;  %s838_s25 = sshll.u32 %s927_s24, 4  ;;  %s839_s25 = int_to_ptr.vmem [resolvable:$false] %s838_s25 }
  0x5d   : > { %s840_s22 = scalar_lea.vmem %s839_s25, 1024  ;;  %p841_p7 = scmp.lt.s32.totalorder %s508_s10, %s839_s25 }
  0x5e   : > { %687 = vmatmul.mubr.msk.f32.vlgmr.msra.gmra.mrb[0].mxu0 %vm313_vm0, %v304_v13  ;;  %p837_p12 = pneg %p836_p6  ;;  %p842_p10 = scmp.lt.s32.totalorder %s840_s22, %s834_s9 }
  0x5f   : > { %688 = vmatmul.mubr.msk.f32.vlgmr.msra.gmra.mrb[0].mxu1 %vm313_vm0, %v304_v13 }
  0x60   : > { %p843_p0 = por %p842_p10, %p841_p7 }
  0x62   : > { %p844_p1 = pnand %p843_p0, %p837_p12 }
 0x131   : > { %v383_v14 = vpop.f32.mrb[0].mxu0 }
 0x132   : > { %459 = vst [vmem:[%s275_s6] sm:$0xff] %v383_v14  ;;  %v470_v15 = vmul.f32 %v383_v14, %v383_v14  ;;  %v385_v16 = vpop.f32.mrb[1].mxu0  ;;  %v454_v17 = vpop.f32.mrb[0].mxu1 }
 0x133   : > { %460 = vst [vmem:[%s275_s6 + $0x8] sm:$0xff] %v385_v16  ;;  %v463_v18 = vadd.f32 %v385_v16, %v383_v14  ;;  %v471_v19 = vmul.f32 %v385_v16, %v385_v16  ;;  %461 = vst [vmem:[%s275_s6 + $0x10] sm:$0xff] %v454_v17  ;;  %v472_v20 = vmul.f32 %v454_v17, %v454_v17  ;;  %v456_v21 = vpop.f32.mrb[1].mxu1 }
 0x134   : > { %462 = vst [vmem:[%s275_s6 + $0x18] sm:$0xff] %v456_v21  ;;  %v473_v24 = vmul.f32 %v456_v21, %v456_v21 }
 0x135   : > { %v474_v22 = vadd.f32 %v471_v19, %v470_v15  ;;  %v464_v23 = vadd.f32 %v463_v18, %v454_v17 }
 0x137   : > { %v465_v25 = vadd.f32 %v464_v23, %v456_v21  ;;  %v475_v26 = vadd.f32 %v474_v22, %v472_v20 }
 0x139   : > { %466 = vadd.xlane.f32.xlu0 %v465_v25  ;;  %v476_v27 = vadd.f32 %v475_v26, %v473_v24 }
 0x13d   : > { %477 = vadd.xlane.f32.xlu0 %v476_v27 }
 0x13e   : > { %847 = shalt.err (!%p844_p1)
}
 0x13f   : > { %s848_s11 = scalar_lea.hbm %s1127_s14, 512  ;;  %s852_s21 = scalar_lea.hbm %s1179_s2, 2048 }
 0x140   : > { %p849_p9 = scmp.ne.s32.totalorder %s1127_s14, %s848_s11  ;;  %p853_p5 = scmp.lt.u32.totalorder %s1127_s14, %s1179_s2 }
 0x141   : > { %p854_p4 = scmp.lt.u32.totalorder %s852_s21, %s848_s11  ;;  %p856_p13 = scmp.lt.u32.totalorder %s848_s11, %s1127_s14 }
 0x142   : > { %p850_p11 = pnand %p849_p9, %p1193_p3 }
 0x143   : > { %p855_p8 = por %p854_p4, %p853_p5 }
 0x144   : > { %p851_p2 = pneg %p850_p11 }
 0x145   : > { %p857_p6 = por %p856_p13, %p855_p8 }
 0x147   : > { %p858_p12 = pnand %p857_p6, %p851_p2 }
 0x149   : > { %861 = shalt.err (!%p858_p12)
}
 0x14a   : > { %708 = dma.vmem_to_hbm [thread:$0]  (%p1193_p3), %s508_s10, 512, %s1127_s14, %s481_s12   ;;  %vm468_vm1 = vcmask 7168  }
 0x14b   : > { %p293_p7 = scmp.lt.s32.totalorder %s912_s18, 3 }
 0x14d   : > { %s1203_s18 = smov (!%p293_p7, %s912_s18), 3 }
 0x14e   : > { %s685_s8 = sshll.u32 %s1203_s18, 3 }
 0x14f   : > { %s296_s9 = scalar_lea.vmem %s1180_s3, %s685_s8  ;;  %s302_s22 = scalar_lea.vmem %s1181_s4, %s685_s8 }
 0x1c6   : > { %v467_v28 = vpop.xlane.xlu0 %466 }
 0x1c7   : > { %469 = vst.msk [vmem:[%s296_s9] sm:$0xff] %vm468_vm1, %v467_v28 }
 0x1ca   : > { %v478_v29 = vpop.xlane.xlu0 %477 }
 0x1cb   : > { %479 = vst.msk [vmem:[%s302_s22] sm:$0xff] %vm468_vm1, %v478_v29 }
 0x1cc PF: > { %p722_p3 = scmp.ge.s32.totalorder %s920_s20, 2  ;;  %s527_s28 = sand.u32 1, %s900_s15  }
 0x1cd   : > { %p1194_p10 = scmp.ne.s32.totalorder %s1187_s30, 0  ;;  %s528_s18 = scalar_lea.sflag [#allocation4], %s527_s28 }
 0x1cf   : > { %p718_p0 = pnand %p722_p3, %p1194_p10 }
 0x1d1   : > { %895 = dma.done.wait (!%p718_p0), %s528_s18, 512  }
 0x1d2   : > { %897 = vsyncadd (!%p718_p0), %s528_s18, 4294966784  ;;  %s24_s20 = sadd.s32 1, %s920_s20   ;;  %s1195_s15 = smov %s904_s16 }
 0x1d3   : > { %p21_p1 = scmp.ge.s32.totalorder %s24_s20, 6   ;;  %s1196_s16 = smov %s908_s17 }
 0x1d4   : > { %s1197_s17 = smov %s1009_s29  ;;  %s1198_s18 = smov %s916_s19 }
 0x1d5   : > { %s1199_s19 = smov %s1201_s23  ;;  %23 = sbr.rel (!%p21_p1) target bundleno = 8 (0x8), region = 110 }
 0x1dc   :  { %549 = vsyncpa [#allocation3], 1 }
 0x1dd   :  { %551 = vsyncpa [#allocation3 + $0x1], 1 }
 0x1de   :  { %552 = vsyncpa [#allocation6], 1 }
 0x1df   :  { %554 = vsyncpa [#allocation6 + $0x1], 1 }
 0x1e0   :  { %555 = vsyncpa [#allocation4], 1 }
 0x1e1   :  { %557 = vsyncpa [#allocation4 + $0x1], 1 }

</bundles_post_ra>
